<compile_context>
chip_gen: v6e
topology: v6e:2x2x1
jax: 0.10.0
libtpu: 0.0.40
codegen_flags: <defaults>
</compile_context>

<pallas_src>
import math
import functools

import jax
import jax.numpy as jnp
from jax.experimental import pallas as pl
from jax.experimental.pallas import tpu as pltpu


def cross_attention_kernel(x_ref, ctx_ref, gamma_ref, beta_ref,
                           wq_ref, wk_ref, wv_ref, wout_ref, o_ref,
                           *, heads, dim_head, eps):
    # x_ref:    (Bb, N, D)    block of batch elements
    # ctx_ref:  (Bb, M, Dc)
    # gamma/beta: (1, D)      f32
    # wq_ref:   (D, H*Dh)     bf16, query scale pre-folded
    # wk_ref:   (Dc, Dh)      bf16
    # wv_ref:   (Dc, Dh)      bf16
    # wout_ref: (H, Dh, D)    bf16, per-head output-projection blocks
    gamma = gamma_ref[...]            # (1, D) f32
    beta = beta_ref[...]              # (1, D) f32
    wq = wq_ref[...]                  # (D, H*Dh) bf16
    wk = wk_ref[...]                  # (Dc, Dh)  bf16
    wv = wv_ref[...]                  # (Dc, Dh)  bf16

    block_b = x_ref.shape[0]
    n = x_ref.shape[1]
    d_model = o_ref.shape[-1]

    # block_b is small (<= 8); a static Python unroll keeps every ref index
    # static and is equivalent to lax.fori_loop(..., unroll=True) here.
    for b in range(block_b):
        x = x_ref[b].astype(jnp.float32)                       # (N, D)

        # --- LayerNorm(x): f32 VPU/EUP math (biased var, eps=1e-5) ---
        mean = jnp.mean(x, axis=-1, keepdims=True)
        xc = x - mean
        var = jnp.mean(xc * xc, axis=-1, keepdims=True)
        xn = (xc * jax.lax.rsqrt(var + eps)) * gamma + beta

        ctx_b = ctx_ref[b].astype(jnp.bfloat16)                # (M, Dc)

        # --- projections: bf16 MXU operands, f32 accumulation ---
        q = jnp.dot(xn.astype(jnp.bfloat16), wq,
                    preferred_element_type=jnp.float32)        # (N, H*Dh) f32
        k = jnp.dot(ctx_b, wk, preferred_element_type=jnp.float32)  # (M, Dh)
        v = jnp.dot(ctx_b, wv, preferred_element_type=jnp.float32)  # (M, Dh)
        kb = k.astype(jnp.bfloat16)
        vb = v.astype(jnp.bfloat16)

        # --- fold heads into rows: q2[(h*N + i), :] = q[i, h*Dh:(h+1)*Dh] ---
        # static lane slices + sublane-aligned concat; no 3-D transpose.
        q2 = jnp.concatenate(
            [q[:, h * dim_head:(h + 1) * dim_head] for h in range(heads)],
            axis=0)                                            # (H*N, Dh) f32

        # --- attention: one matmul for all heads (k/v shared across heads) --
        sim = jax.lax.dot_general(
            q2.astype(jnp.bfloat16), kb,
            (((1,), (1,)), ((), ())),
            preferred_element_type=jnp.float32)                # (H*N, M) f32
        sim = sim - jnp.max(sim, axis=-1, keepdims=True)
        p = jnp.exp(sim)
        attn = p * pl.reciprocal(jnp.sum(p, axis=-1, keepdims=True),
                                 approx=True)

        out2 = jnp.dot(attn.astype(jnp.bfloat16), vb,
                       preferred_element_type=jnp.float32)     # (H*N, Dh) f32

        # --- output projection:  out @ Wout == sum_h out_h @ Wout[h] ---
        acc = jnp.zeros((n, d_model), jnp.float32)
        for h in range(heads):
            o_h = out2[h * n:(h + 1) * n, :].astype(jnp.bfloat16)   # (N, Dh)
            acc = acc + jnp.dot(o_h, wout_ref[h],
                                preferred_element_type=jnp.float32)  # (N, D)

        o_ref[b] = acc.astype(o_ref.dtype)


def _pick_block_b(batch, target=8):
    """Batch elements per grid step: a divisor of B, <= target, keeping >= 2
    grid steps when B >= 2 so the parallel batch axis spans both v7x cores."""
    if batch <= 1:
        return 1
    best = 1
    limit = min(target, batch // 2)
    for cand in range(1, limit + 1):
        if batch % cand == 0:
            best = cand
    return best


def cross_attention(x, context, gamma, beta, wq_scaled, wk, wv, wout_heads,
                    *, heads, dim_head, block_b=None):
    B, N, D = x.shape
    _, M, Dc = context.shape
    inner = heads * dim_head
    assert wq_scaled.shape == (D, inner)
    assert wk.shape == (Dc, dim_head) and wv.shape == (Dc, dim_head)
    assert wout_heads.shape == (heads, dim_head, D)

    if block_b is None:
        block_b = _pick_block_b(B)
    assert B % block_b == 0
    grid = (B // block_b,)

    kernel = functools.partial(cross_attention_kernel,
                               heads=heads, dim_head=dim_head, eps=1e-5)

    return pl.pallas_call(
        kernel,
        out_shape=jax.ShapeDtypeStruct((B, N, D), x.dtype),
        grid_spec=pltpu.PrefetchScalarGridSpec(
            num_scalar_prefetch=0,
            grid=grid,
            in_specs=[
                pl.BlockSpec((block_b, N, D), lambda b: (b, 0, 0)),       # x
                pl.BlockSpec((block_b, M, Dc), lambda b: (b, 0, 0)),      # context
                pl.BlockSpec((1, D), lambda b: (0, 0)),                   # gamma
                pl.BlockSpec((1, D), lambda b: (0, 0)),                   # beta
                pl.BlockSpec((D, inner), lambda b: (0, 0)),               # Wq (scaled)
                pl.BlockSpec((Dc, dim_head), lambda b: (0, 0)),           # Wk
                pl.BlockSpec((Dc, dim_head), lambda b: (0, 0)),           # Wv
                pl.BlockSpec((heads, dim_head, D), lambda b: (0, 0, 0)),  # Wout
            ],
            out_specs=pl.BlockSpec((block_b, N, D), lambda b: (b, 0, 0)),
        ),
        compiler_params=pltpu.CompilerParams(
            dimension_semantics=("parallel",)),
    )(x, context, gamma, beta, wq_scaled, wk, wv, wout_heads)


def cross_attention_ref(x, context, gamma, beta, wq, wkv, wout,
                        *, heads, dim_head):
    """Pure-JAX f32 reference mirroring the PyTorch forward."""
    eps = 1e-5
    scale = dim_head ** -0.5
    mean = jnp.mean(x, axis=-1, keepdims=True)
    var = jnp.mean((x - mean) ** 2, axis=-1, keepdims=True)
    xn = (x - mean) / jnp.sqrt(var + eps) * gamma[0] + beta[0]

    q = xn @ wq                                    # (B, N, H*Dh)
    B, N, _ = q.shape
    q = q.reshape(B, N, heads, dim_head).transpose(0, 2, 1, 3) * scale
    kv = context @ wkv
    k, v = kv[..., :dim_head], kv[..., dim_head:]
    sim = jnp.einsum('bhid,bjd->bhij', q, k)
    sim = sim - jnp.max(sim, axis=-1, keepdims=True)
    attn = jax.nn.softmax(sim, axis=-1)
    out = jnp.einsum('bhij,bjd->bhid', attn, v)
    out = out.transpose(0, 2, 1, 3).reshape(B, N, heads * dim_head)
    return out @ wout


if __name__ == "__main__":
    # Small shapes consistent with the module's forward.
    B, N, M = 2, 8, 8
    dim = 32
    context_dim = 32
    heads = 4
    dim_head = 16
    inner_dim = heads * dim_head
    scale = dim_head ** -0.5

    key = jax.random.PRNGKey(0)
    k_x, k_c, k_q, k_kv, k_o = jax.random.split(key, 5)

    x = jax.random.normal(k_x, (B, N, dim), dtype=jnp.float32)
    context = jax.random.normal(k_c, (B, M, context_dim), dtype=jnp.float32)

    def linear_w(k, fan_in, fan_out):
        bound = 1.0 / math.sqrt(fan_in)
        return jax.random.uniform(k, (fan_in, fan_out), jnp.float32,
                                  minval=-bound, maxval=bound)

    wq = linear_w(k_q, dim, inner_dim)
    wkv = linear_w(k_kv, context_dim, 2 * dim_head)
    wout = linear_w(k_o, inner_dim, dim)
    gamma = jnp.ones((1, dim), jnp.float32)   # LayerNorm gamma (init = ones)
    beta = jnp.zeros((1, dim), jnp.float32)   # LayerNorm beta buffer (zeros)

    # One-time host-side parameter prep for the kernel:
    #   - fold the 1/sqrt(dim_head) query scale into Wq,
    #   - split Wkv into Wk / Wv (kernel never mid-tile-slices kv),
    #   - reshape Wout into per-head (H, Dh, D) blocks,
    #   - store all matmul weights in bf16 for the MXU.
    wq_k = (wq * scale).astype(jnp.bfloat16)
    wk_k = wkv[:, :dim_head].astype(jnp.bfloat16)
    wv_k = wkv[:, dim_head:].astype(jnp.bfloat16)
    wout_k = wout.reshape(heads, dim_head, dim).astype(jnp.bfloat16)

    out = cross_attention(x, context, gamma, beta, wq_k, wk_k, wv_k, wout_k,
                          heads=heads, dim_head=dim_head)
    out = jax.block_until_ready(out)

    ref = cross_attention_ref(x, context, gamma, beta, wq, wkv, wout,
                              heads=heads, dim_head=dim_head)
    assert out.shape == (B, N, dim)
    err = float(jnp.max(jnp.abs(out - ref)))
    # bf16 MXU operands + approx softmax reciprocal => looser tolerance than
    # an all-f32 kernel.
    assert jnp.allclose(out, ref, atol=5e-2, rtol=5e-2), f"max abs err {err}"

    print("KERNEL_OK")
</pallas_src>

<mosaic_0001>
module attributes {stable_mosaic.version = 11 : i64} {
  func.func @cross_attention_kernel(%arg0: i32, %arg1: memref<1x8x32xf32, #tpu.memory_space<vmem>>, %arg2: memref<1x8x32xf32, #tpu.memory_space<vmem>>, %arg3: memref<1x32xf32, #tpu.memory_space<vmem>>, %arg4: memref<1x32xf32, #tpu.memory_space<vmem>>, %arg5: memref<32x64xbf16, #tpu.memory_space<vmem>>, %arg6: memref<32x16xbf16, #tpu.memory_space<vmem>>, %arg7: memref<32x16xbf16, #tpu.memory_space<vmem>>, %arg8: memref<4x16x32xbf16, #tpu.memory_space<vmem>>, %arg9: memref<1x8x32xf32, #tpu.memory_space<vmem>>) attributes {dimension_semantics = [#tpu.dimension_semantics<parallel>], iteration_bounds = array<i64: 2>, scalar_prefetch = 0 : i64, scratch_operands = 0 : i64, tpu.core_type = #tpu.core_type<tc>, window_params = [{transform_indices = @transform_0, window_bounds = array<i64: 1, 8, 32>}, {transform_indices = @transform_1, window_bounds = array<i64: 1, 8, 32>}, {pipeline_mode = #tpu.pipeline_mode<synchronous>, transform_indices = @transform_2, window_bounds = array<i64: 1, 32>}, {pipeline_mode = #tpu.pipeline_mode<synchronous>, transform_indices = @transform_3, window_bounds = array<i64: 1, 32>}, {pipeline_mode = #tpu.pipeline_mode<synchronous>, transform_indices = @transform_4, window_bounds = array<i64: 32, 64>}, {pipeline_mode = #tpu.pipeline_mode<synchronous>, transform_indices = @transform_5, window_bounds = array<i64: 32, 16>}, {pipeline_mode = #tpu.pipeline_mode<synchronous>, transform_indices = @transform_6, window_bounds = array<i64: 32, 16>}, {pipeline_mode = #tpu.pipeline_mode<synchronous>, transform_indices = @transform_7, window_bounds = array<i64: 4, 16, 32>}, {transform_indices = @transform_8, window_bounds = array<i64: 1, 8, 32>}]} {
    %c0 = arith.constant 0 : index
    %c0_0 = arith.constant 0 : index
    %0 = vector.load %arg3[%c0, %c0_0] : memref<1x32xf32, #tpu.memory_space<vmem>>, vector<1x32xf32>
    %c0_1 = arith.constant 0 : index
    %c0_2 = arith.constant 0 : index
    %1 = vector.load %arg4[%c0_1, %c0_2] : memref<1x32xf32, #tpu.memory_space<vmem>>, vector<1x32xf32>
    %c0_3 = arith.constant 0 : index
    %c0_4 = arith.constant 0 : index
    %2 = vector.load %arg5[%c0_3, %c0_4] : memref<32x64xbf16, #tpu.memory_space<vmem>>, vector<32x64xbf16>
    %c0_5 = arith.constant 0 : index
    %c0_6 = arith.constant 0 : index
    %3 = vector.load %arg6[%c0_5, %c0_6] : memref<32x16xbf16, #tpu.memory_space<vmem>>, vector<32x16xbf16>
    %c0_7 = arith.constant 0 : index
    %c0_8 = arith.constant 0 : index
    %4 = vector.load %arg7[%c0_7, %c0_8] : memref<32x16xbf16, #tpu.memory_space<vmem>>, vector<32x16xbf16>
    %c0_9 = arith.constant 0 : index
    %c0_10 = arith.constant 0 : index
    %c0_11 = arith.constant 0 : index
    %5 = vector.load %arg1[%c0_9, %c0_10, %c0_11] : memref<1x8x32xf32, #tpu.memory_space<vmem>>, vector<1x8x32xf32>
    %6 = vector.shape_cast %5 : vector<1x8x32xf32> to vector<8x32xf32>
    %cst = arith.constant dense<0.000000e+00> : vector<8xf32>
    %7 = vector.multi_reduction <add>, %6, %cst [1] : vector<8x32xf32> to vector<8xf32>
    %8 = vector.shape_cast %7 : vector<8xf32> to vector<8x1xf32>
    %cst_12 = arith.constant 3.200000e+01 : f32
    %9 = vector.broadcast %cst_12 : f32 to vector<8x1xf32>
    %10 = arith.divf %8, %9 : vector<8x1xf32>
    %11 = vector.broadcast %10 : vector<8x1xf32> to vector<8x32xf32>
    %12 = arith.subf %6, %11 : vector<8x32xf32>
    %13 = arith.mulf %12, %12 : vector<8x32xf32>
    %cst_13 = arith.constant dense<0.000000e+00> : vector<8xf32>
    %14 = vector.multi_reduction <add>, %13, %cst_13 [1] : vector<8x32xf32> to vector<8xf32>
    %15 = vector.shape_cast %14 : vector<8xf32> to vector<8x1xf32>
    %cst_14 = arith.constant 3.200000e+01 : f32
    %16 = vector.broadcast %cst_14 : f32 to vector<8x1xf32>
    %17 = arith.divf %15, %16 : vector<8x1xf32>
    %cst_15 = arith.constant 9.99999974E-6 : f32
    %18 = vector.broadcast %cst_15 : f32 to vector<8x1xf32>
    %19 = arith.addf %17, %18 : vector<8x1xf32>
    %20 = math.rsqrt %19 : vector<8x1xf32>
    %21 = vector.broadcast %20 : vector<8x1xf32> to vector<8x32xf32>
    %22 = arith.mulf %12, %21 : vector<8x32xf32>
    %23 = vector.broadcast %0 : vector<1x32xf32> to vector<8x32xf32>
    %24 = arith.mulf %22, %23 : vector<8x32xf32>
    %25 = vector.broadcast %1 : vector<1x32xf32> to vector<8x32xf32>
    %26 = arith.addf %24, %25 : vector<8x32xf32>
    %c0_16 = arith.constant 0 : index
    %c0_17 = arith.constant 0 : index
    %c0_18 = arith.constant 0 : index
    %27 = vector.load %arg2[%c0_16, %c0_17, %c0_18] : memref<1x8x32xf32, #tpu.memory_space<vmem>>, vector<1x8x32xf32>
    %28 = vector.shape_cast %27 : vector<1x8x32xf32> to vector<8x32xf32>
    %29 = arith.truncf %28 : vector<8x32xf32> to vector<8x32xbf16>
    %30 = arith.truncf %26 : vector<8x32xf32> to vector<8x32xbf16>
    %cst_19 = arith.constant dense<0.000000e+00> : vector<8x64xf32>
    %31 = tpu.matmul %30, %2, %cst_19 {dimension_numbers = #tpu.dot_dimension_numbers<[1], [0], [0], [1], [0, 0, 1, 1], [], []>} : vector<8x32xbf16>, vector<32x64xbf16>, vector<8x64xf32> -> vector<8x64xf32>
    %cst_20 = arith.constant dense<0.000000e+00> : vector<8x16xf32>
    %32 = tpu.matmul %29, %3, %cst_20 {dimension_numbers = #tpu.dot_dimension_numbers<[1], [0], [0], [1], [0, 0, 1, 1], [], []>} : vector<8x32xbf16>, vector<32x16xbf16>, vector<8x16xf32> -> vector<8x16xf32>
    %cst_21 = arith.constant dense<0.000000e+00> : vector<8x16xf32>
    %33 = tpu.matmul %29, %4, %cst_21 {dimension_numbers = #tpu.dot_dimension_numbers<[1], [0], [0], [1], [0, 0, 1, 1], [], []>} : vector<8x32xbf16>, vector<32x16xbf16>, vector<8x16xf32> -> vector<8x16xf32>
    %34 = arith.truncf %32 : vector<8x16xf32> to vector<8x16xbf16>
    %35 = arith.truncf %33 : vector<8x16xf32> to vector<8x16xbf16>
    %36 = vector.extract_strided_slice %31 {offsets = [0, 0], sizes = [8, 16], strides = [1, 1]} : vector<8x64xf32> to vector<8x16xf32>
    %37 = vector.extract_strided_slice %31 {offsets = [0, 16], sizes = [8, 16], strides = [1, 1]} : vector<8x64xf32> to vector<8x16xf32>
    %38 = vector.extract_strided_slice %31 {offsets = [0, 32], sizes = [8, 16], strides = [1, 1]} : vector<8x64xf32> to vector<8x16xf32>
    %39 = vector.extract_strided_slice %31 {offsets = [0, 48], sizes = [8, 16], strides = [1, 1]} : vector<8x64xf32> to vector<8x16xf32>
    %40 = tpu.concatenate %36, %37, %38, %39 in 0 : vector<8x16xf32>, vector<8x16xf32>, vector<8x16xf32>, vector<8x16xf32> -> vector<32x16xf32>
    %41 = arith.truncf %40 : vector<32x16xf32> to vector<32x16xbf16>
    %cst_22 = arith.constant dense<0.000000e+00> : vector<32x8xf32>
    %42 = tpu.matmul %41, %34, %cst_22 {dimension_numbers = #tpu.dot_dimension_numbers<[1], [1], [0], [0], [0, 0, 1, 0], [], []>} : vector<32x16xbf16>, vector<8x16xbf16>, vector<32x8xf32> -> vector<32x8xf32>
    %cst_23 = arith.constant dense<0xFF800000> : vector<32xf32>
    %43 = vector.multi_reduction <maximumf>, %42, %cst_23 [1] : vector<32x8xf32> to vector<32xf32>
    %44 = vector.shape_cast %43 : vector<32xf32> to vector<32x1xf32>
    %45 = vector.broadcast %44 : vector<32x1xf32> to vector<32x8xf32>
    %46 = arith.subf %42, %45 : vector<32x8xf32>
    %47 = math.exp %46 : vector<32x8xf32>
    %cst_24 = arith.constant dense<0.000000e+00> : vector<32xf32>
    %48 = vector.multi_reduction <add>, %47, %cst_24 [1] : vector<32x8xf32> to vector<32xf32>
    %49 = vector.shape_cast %48 : vector<32xf32> to vector<32x1xf32>
    %50 = tpu.reciprocal %49 {approx = true} : vector<32x1xf32> -> vector<32x1xf32>
    %51 = vector.broadcast %50 : vector<32x1xf32> to vector<32x8xf32>
    %52 = arith.mulf %47, %51 : vector<32x8xf32>
    %53 = arith.truncf %52 : vector<32x8xf32> to vector<32x8xbf16>
    %cst_25 = arith.constant dense<0.000000e+00> : vector<32x16xf32>
    %54 = tpu.matmul %53, %35, %cst_25 {dimension_numbers = #tpu.dot_dimension_numbers<[1], [0], [0], [1], [0, 0, 1, 1], [], []>} : vector<32x8xbf16>, vector<8x16xbf16>, vector<32x16xf32> -> vector<32x16xf32>
    %cst_26 = arith.constant 0.000000e+00 : f32
    %55 = vector.broadcast %cst_26 : f32 to vector<8x32xf32>
    %56 = vector.extract_strided_slice %54 {offsets = [0, 0], sizes = [8, 16], strides = [1, 1]} : vector<32x16xf32> to vector<8x16xf32>
    %57 = arith.truncf %56 : vector<8x16xf32> to vector<8x16xbf16>
    %c0_27 = arith.constant 0 : index
    %c0_28 = arith.constant 0 : index
    %c0_29 = arith.constant 0 : index
    %58 = vector.load %arg8[%c0_27, %c0_28, %c0_29] : memref<4x16x32xbf16, #tpu.memory_space<vmem>>, vector<1x16x32xbf16>
    %59 = vector.shape_cast %58 : vector<1x16x32xbf16> to vector<16x32xbf16>
    %cst_30 = arith.constant dense<0.000000e+00> : vector<8x32xf32>
    %60 = tpu.matmul %57, %59, %cst_30 {dimension_numbers = #tpu.dot_dimension_numbers<[1], [0], [0], [1], [0, 0, 1, 1], [], []>} : vector<8x16xbf16>, vector<16x32xbf16>, vector<8x32xf32> -> vector<8x32xf32>
    %61 = arith.addf %55, %60 : vector<8x32xf32>
    %62 = vector.extract_strided_slice %54 {offsets = [8, 0], sizes = [8, 16], strides = [1, 1]} : vector<32x16xf32> to vector<8x16xf32>
    %63 = arith.truncf %62 : vector<8x16xf32> to vector<8x16xbf16>
    %c1 = arith.constant 1 : index
    %c0_31 = arith.constant 0 : index
    %c0_32 = arith.constant 0 : index
    %64 = vector.load %arg8[%c1, %c0_31, %c0_32] : memref<4x16x32xbf16, #tpu.memory_space<vmem>>, vector<1x16x32xbf16>
    %65 = vector.shape_cast %64 : vector<1x16x32xbf16> to vector<16x32xbf16>
    %cst_33 = arith.constant dense<0.000000e+00> : vector<8x32xf32>
    %66 = tpu.matmul %63, %65, %cst_33 {dimension_numbers = #tpu.dot_dimension_numbers<[1], [0], [0], [1], [0, 0, 1, 1], [], []>} : vector<8x16xbf16>, vector<16x32xbf16>, vector<8x32xf32> -> vector<8x32xf32>
    %67 = arith.addf %61, %66 : vector<8x32xf32>
    %68 = vector.extract_strided_slice %54 {offsets = [16, 0], sizes = [8, 16], strides = [1, 1]} : vector<32x16xf32> to vector<8x16xf32>
    %69 = arith.truncf %68 : vector<8x16xf32> to vector<8x16xbf16>
    %c2 = arith.constant 2 : index
    %c0_34 = arith.constant 0 : index
    %c0_35 = arith.constant 0 : index
    %70 = vector.load %arg8[%c2, %c0_34, %c0_35] : memref<4x16x32xbf16, #tpu.memory_space<vmem>>, vector<1x16x32xbf16>
    %71 = vector.shape_cast %70 : vector<1x16x32xbf16> to vector<16x32xbf16>
    %cst_36 = arith.constant dense<0.000000e+00> : vector<8x32xf32>
    %72 = tpu.matmul %69, %71, %cst_36 {dimension_numbers = #tpu.dot_dimension_numbers<[1], [0], [0], [1], [0, 0, 1, 1], [], []>} : vector<8x16xbf16>, vector<16x32xbf16>, vector<8x32xf32> -> vector<8x32xf32>
    %73 = arith.addf %67, %72 : vector<8x32xf32>
    %74 = vector.extract_strided_slice %54 {offsets = [24, 0], sizes = [8, 16], strides = [1, 1]} : vector<32x16xf32> to vector<8x16xf32>
    %75 = arith.truncf %74 : vector<8x16xf32> to vector<8x16xbf16>
    %c3 = arith.constant 3 : index
    %c0_37 = arith.constant 0 : index
    %c0_38 = arith.constant 0 : index
    %76 = vector.load %arg8[%c3, %c0_37, %c0_38] : memref<4x16x32xbf16, #tpu.memory_space<vmem>>, vector<1x16x32xbf16>
    %77 = vector.shape_cast %76 : vector<1x16x32xbf16> to vector<16x32xbf16>
    %cst_39 = arith.constant dense<0.000000e+00> : vector<8x32xf32>
    %78 = tpu.matmul %75, %77, %cst_39 {dimension_numbers = #tpu.dot_dimension_numbers<[1], [0], [0], [1], [0, 0, 1, 1], [], []>} : vector<8x16xbf16>, vector<16x32xbf16>, vector<8x32xf32> -> vector<8x32xf32>
    %79 = arith.addf %73, %78 : vector<8x32xf32>
    %c0_40 = arith.constant 0 : index
    %c0_41 = arith.constant 0 : index
    %c0_42 = arith.constant 0 : index
    %80 = vector.load %arg9[%c0_40, %c0_41, %c0_42] : memref<1x8x32xf32, #tpu.memory_space<vmem>>, vector<1x8x32xf32>
    %81 = vector.shape_cast %80 : vector<1x8x32xf32> to vector<8x32xf32>
    %82 = vector.shape_cast %79 : vector<8x32xf32> to vector<1x8x32xf32>
    tpu.vector_store %arg9[%c0_40, %c0_41, %c0_42], %82 {strides = array<i32>} : memref<1x8x32xf32, #tpu.memory_space<vmem>>, vector<1x8x32xf32>,
    return
  }
  func.func @transform_0(%arg0: i32) -> (i32, i32, i32) {
    %c0_i32 = arith.constant 0 : i32
    %c0_i32_0 = arith.constant 0 : i32
    %c0_i32_1 = arith.constant 0 : i32
    return %arg0, %c0_i32, %c0_i32_0 : i32, i32, i32
  }
  func.func @transform_1(%arg0: i32) -> (i32, i32, i32) {
    %c0_i32 = arith.constant 0 : i32
    %c0_i32_0 = arith.constant 0 : i32
    %c0_i32_1 = arith.constant 0 : i32
    return %arg0, %c0_i32, %c0_i32_0 : i32, i32, i32
  }
  func.func @transform_2(%arg0: i32) -> (i32, i32) {
    %c0_i32 = arith.constant 0 : i32
    %c0_i32_0 = arith.constant 0 : i32
    %c0_i32_1 = arith.constant 0 : i32
    return %c0_i32, %c0_i32_0 : i32, i32
  }
  func.func @transform_3(%arg0: i32) -> (i32, i32) {
    %c0_i32 = arith.constant 0 : i32
    %c0_i32_0 = arith.constant 0 : i32
    %c0_i32_1 = arith.constant 0 : i32
    return %c0_i32, %c0_i32_0 : i32, i32
  }
  func.func @transform_4(%arg0: i32) -> (i32, i32) {
    %c0_i32 = arith.constant 0 : i32
    %c0_i32_0 = arith.constant 0 : i32
    %c0_i32_1 = arith.constant 0 : i32
    return %c0_i32, %c0_i32_0 : i32, i32
  }
  func.func @transform_5(%arg0: i32) -> (i32, i32) {
    %c0_i32 = arith.constant 0 : i32
    %c0_i32_0 = arith.constant 0 : i32
    %c0_i32_1 = arith.constant 0 : i32
    return %c0_i32, %c0_i32_0 : i32, i32
  }
  func.func @transform_6(%arg0: i32) -> (i32, i32) {
    %c0_i32 = arith.constant 0 : i32
    %c0_i32_0 = arith.constant 0 : i32
    %c0_i32_1 = arith.constant 0 : i32
    return %c0_i32, %c0_i32_0 : i32, i32
  }
  func.func @transform_7(%arg0: i32) -> (i32, i32, i32) {
    %c0_i32 = arith.constant 0 : i32
    %c0_i32_0 = arith.constant 0 : i32
    %c0_i32_1 = arith.constant 0 : i32
    %c0_i32_2 = arith.constant 0 : i32
    return %c0_i32, %c0_i32_0, %c0_i32_1 : i32, i32, i32
  }
  func.func @transform_8(%arg0: i32) -> (i32, i32, i32) {
    %c0_i32 = arith.constant 0 : i32
    %c0_i32_0 = arith.constant 0 : i32
    %c0_i32_1 = arith.constant 0 : i32
    return %arg0, %c0_i32, %c0_i32_0 : i32, i32, i32
  }
}

</mosaic_0001>

<bundles_post_ra>
// kernel: tpu_custom_call.1
= control target key start
LH: loop header
LB: loop body
LE: loop exit
PB: predicated region body
PF: predicated region fallthrough
CT: control target
= control target key end

     0   :  { %s1718_s0 = inlined_call_operand.vmem [shape: f32[2,8,32], index: 0, kind: input, shape index: {}]   ;;  %s1719_s1 = inlined_call_operand.hbm [shape: f32[2,8,32], index: 1, kind: input, shape index: {}]   ;;  %s1720_s2 = inlined_call_operand.vmem [shape: f32[1,32], index: 2, kind: input, shape index: {}]   ;;  %s1721_s3 = inlined_call_operand.vmem [shape: f32[1,32], index: 3, kind: input, shape index: {}]   ;;  %s1722_s4 = inlined_call_operand.hbm [shape: bf16[32,64], index: 4, kind: input, shape index: {}]   ;;  %s1723_s5 = inlined_call_operand.vmem [shape: bf16[32,16], index: 5, kind: input, shape index: {}]   ;;  %s1724_s6 = inlined_call_operand.vmem [shape: bf16[32,16], index: 6, kind: input, shape index: {}]   ;;  %s1725_s7 = inlined_call_operand.vmem [shape: bf16[4,16,32], index: 7, kind: input, shape index: {}]   ;;  %s1726_s8 = inlined_call_operand.hbm [shape: f32[2,8,32], index: 8, kind: output, shape index: {}]  }
   0x1   :  { %1733 = sst [smem:[#allocation13_spill]] %s1722_s4 }
   0x2   :  { %13 = vsyncpa [#allocation3], 0 }
   0x3   :  { %15 = vsyncpa [#allocation3 + $0x1], 0 }
   0x4   :  { %16 = vsyncpa [#allocation6], 0 }
   0x5   :  { %17 = vsyncpa [#allocation4], 0 }
   0x6   :  { %19 = vsyncpa [#allocation4 + $0x1], 0  ;;  %s1462_s27 = smov 0   ;;  %s1464_s28 = smov 0  }
   0x7   :  { %s1466_s29 = smov 0   ;;  %s1468_s30 = smov 0  }
   0x8 LB: > { %s1483_s9 = sadd.s32 4294967295, %s1405_s30   ;;  %s1062_s10 = sadd.s32 4294967294, %s1405_s30   ;;  %s1405_s30 = sphi %s1468_s30, %s1751_s30   ;;  %s1401_s29 = sphi %s1466_s29, %s1755_s29   ;;  %s1397_s28 = sphi %s1464_s28, %s1754_s28   ;;  %s1393_s27 = sphi %s1462_s27, %s1753_s27  }
   0x9   : > { %p71_p0 = scmp.ne.s32.totalorder %s1397_s28, %s1393_s27  ;;  %p1729_p1 = scmp.eq.s32.totalorder %s1483_s9, 0 }
   0xa   : > { %p227_p3 = scmp.eq.s32.totalorder %s1062_s10, 1  ;;  %p1063_p5 = scmp.ge.s32.totalorder %s1405_s30, 1 }
   0xb   : > { %p1492_p4 = por %p1729_p1, %p71_p0  ;;  %p234_p7 = scmp.lt.s32.totalorder %s1405_s30, 3 }
   0xc   : > { %p1497_p6 = por %p227_p3, %p71_p0  ;;  %s1407_s14 = smov [#allocation5]  }
   0xd   : > { %s1734_s11 = scalar_select %p1492_p4, 1, 0 }
   0xe   : > { %s1735_s12 = scalar_select %p1497_p6, 1, 0 }
   0xf   : > { %p1502_p8 = pnand %p1063_p5, %p234_p7  ;;  %s252_s15 = sshll.u32 %s1407_s14, 4  ;;  %s253_s15 = int_to_ptr.vmem [resolvable:$true] %s252_s15 }
  0x10   : > { %s1516_s17 = sadd.s32 1, %s1405_s30   ;;  %s58_s18 = sadd.s32 1, %s1401_s29 }
  0x11   : > { %s1736_s13 = scalar_select %p1502_p8, 1, 0 }
  0x12   : > { %p1199_p9 = pneg %p1502_p8  ;;  %1738 = sst [smem:[#allocation11_spill]] %s1516_s17 }
  0x13   : > { %s55_s19 = ssub.s32 %s1405_s30, %s1516_s17  ;;  %s1294_s20 = scalar_lea.vmem %s253_s15, 256 }
  0x14   : > { %p1511_p11 = pnand %p1199_p9, %p1729_p1  ;;  %p1295_p13 = scmp.ne.s32.totalorder %s253_s15, %s1294_s20 }
  0x15   : > { %p1302_p5 = scmp.lt.s32.totalorder %s253_s15, %s253_s15  ;;  %p1303_p7 = scmp.lt.s32.totalorder %s1294_s20, %s1294_s20 }
  0x16   : > { %p1285_p12 = pneg %p1511_p11 }
  0x17   : > { %p1304_p10 = por %p1303_p7, %p1302_p5 }
  0x18   : > { %p1297_p0 = pnand %p1295_p13, %p1285_p12 }
  0x1a   : > { %p1298_p3 = pneg %p1297_p0 }
  0x1c   : > { %p1305_p2 = pnand %p1304_p10, %p1298_p3 }
  0x1e   : > { %1308 = shalt.err (!%p1305_p2)
}
  0x1f   : > { %s1408_s21 = smov 64   ;;  %s1409_s22 = smov 4  }
  0x20   : > { %s1739_s4 = sld [smem:[#allocation13_spill]]  ;;  %p56_p9 = scmp.eq.s32.totalorder %s55_s19, 0 }
  0x21   : > { %p65_p12 = scmp.ne.s32.totalorder %s1401_s29, %s1397_s28  ;;  %p66_p10 = scmp.eq.s32.totalorder %s1405_s30, 0 }
  0x22   : > { %p1212_p2 = scmp.lt.s32.totalorder %s1405_s30, 2  ;;  %p1741_p0 = scmp.eq.s32.totalorder %s1483_s9, 1 }
  0x23   : > { %s1533_s25 = scalar_select %p56_p9, %s1401_s29, %s58_s18  }
  0x24   : > { %p67_p13 = por %p66_p10, %p65_p12  ;;  %p1537_p3 = por %p1741_p0, %p65_p12 }
  0x25   : > { %1740 = sst [smem:[#allocation12_spill]] %s1533_s25  ;;  %s282_s10 = sand.u32 1, %s1401_s29  }
  0x26   : > { %1202 = dma.hbm_to_vmem [thread:$0]  (!%p1511_p11), %s1739_s4, 256, %s253_s15, [#allocation6], %s1408_s21, %s1408_s21, %s1409_s22  }
  0x27   : > { %s1742_s26 = scalar_select %p1537_p3, 1, 0 }
  0x28   : > { %s1067_s14 = sshll.u32 %s1405_s30, 7  ;;  %s1066_s20 = sshll.u32 %s282_s10, 3 }
  0x29   : > { %s1546_s23 = scalar_lea.hbm %s1719_s1, %s1067_s14  ;;  %s286_s15 = scalar_lea.vmem [#allocation2], %s1066_s20 }
  0x2a   : > { %s293_s18 = sshll.u32 %s286_s15, 4  ;;  %p1548_p11 = pnand %p1212_p2, %p67_p13  ;;  %s294_s18 = int_to_ptr.vmem [resolvable:$true] %s293_s18 }
  0x2b   : > { %s283_s21 = scalar_lea.sflag [#allocation3], %s282_s10  ;;  %s1309_s22 = scalar_lea.hbm %s1546_s23, 128 }
  0x2c   : > { %p1310_p5 = scmp.ne.s32.totalorder %s1546_s23, %s1309_s22  ;;  %p1311_p7 = pneg %p1548_p11 }
  0x2d   : > { %s1314_s14 = scalar_lea.hbm %s1719_s1, 256  ;;  %p1315_p10 = scmp.lt.s32.totalorder %s1546_s23, %s1719_s1 }
  0x2e   : > { %p1312_p9 = pnand %p1311_p7, %p1310_p5  ;;  %p1316_p2 = scmp.lt.s32.totalorder %s1314_s14, %s1309_s22 }
  0x30   : > { %p1313_p12 = pneg %p1312_p9  ;;  %p1317_p13 = por %p1316_p2, %p1315_p10 }
  0x32   : > { %p1318_p0 = pnand %p1317_p13, %p1313_p12 }
  0x34   : > { %1321 = shalt.err (!%p1318_p0)
}
  0x35   : > { %s1322_s15 = scalar_lea.vmem %s294_s18, 128  ;;  %s1410_s10 = smov [#allocation2]  }
  0x36   : > { %p1323_p1 = scmp.ne.s32.totalorder %s294_s18, %s1322_s15  ;;  %s1327_s4 = sshll.u32 %s1410_s10, 4  ;;  %s1328_s4 = int_to_ptr.vmem [resolvable:$false] %s1327_s4 }
  0x37   : > { %s1329_s25 = scalar_lea.vmem %s1328_s4, 256  ;;  %p1330_p5 = scmp.lt.s32.totalorder %s294_s18, %s1328_s4 }
  0x38   : > { %p1325_p6 = pnand %p1323_p1, %p1311_p7  ;;  %p1331_p9 = scmp.lt.s32.totalorder %s1329_s25, %s1322_s15 }
  0x3a   : > { %p1326_p3 = pneg %p1325_p6  ;;  %p1332_p4 = por %p1331_p9, %p1330_p5 }
  0x3c   : > { %p1333_p8 = pnand %p1332_p4, %p1326_p3 }
  0x3e   : > { %1336 = shalt.err (!%p1333_p8)
}
  0x3f   : > { %1206 = dma.hbm_to_vmem [thread:$0]  (!%p1548_p11), %s1546_s23, 128, %s294_s18, %s283_s21  }
  0x40   : > { %p1744_p12 = scmp.ne.s32.totalorder %s1736_s13, 0 }
  0x41   : > { %s1569_s22 = sand.u32 (!%p1744_p12), 1, %s1397_s28   ;;  %p1745_p1 = scmp.ne.s32.totalorder (!%p1744_p12), %s1734_s11, 0 }
  0x42   : > { %302 = sbr.rel (%p1744_p12) target bundleno = 1644 (0x66c), region = 52  ;;  %s1069_s17 = sshll.u32 (!%p1744_p12), %s1569_s22, 3 }
  0x43   : > { %s305_s4 = scalar_lea.sflag (!%p1744_p12), [#allocation3], %s1569_s22  ;;  %s1575_s25 = scalar_lea.vmem (!%p1744_p12), [#allocation2], %s1069_s17 }
  0x47   : > { %1380 = dma.done.wait (%p1745_p1), %s305_s4, 128  }
  0x48   : > { %1382 = vsyncadd (%p1745_p1), %s305_s4, 4294967168  ;;  %p1746_p4 = scmp.eq.s32.totalorder %s1483_s9, 0 }
  0x4a   : > { %1384 = dma.done.wait (%p1746_p4), [#allocation6], 256   ;;  %p1747_p6 = pmov %p1746_p4 }
  0x4b   : > { %p349_p8 = scmp.lt.s32.totalorder %s1483_s9, 1  ;;  %vm369_vm0 = vcmask 261120   ;;  %v1255_v7 = vld [vmem:[#allocation5 + $0x8] sm:$0xff]   ;;  %v1411_v8 = vmov 0.0   ;;  %vm1412_vm1 = vmmov 0   ;;  %v1256_v9 = vld [vmem:[#allocation5] sm:$0xff]  }
  0x4c   : > { %1386 = vsyncadd (%p1747_p6), [#allocation6], 4294967040  ;;  %1129 = vmatprep.subr.bf16.mxu0 %v1411_v8  ;;  %1133 = vmatprep.mubr.msk.bf16.mxu0 %vm1412_vm1, %v1411_v8  ;;  %v1257_v10 = vld [vmem:[%s1723_s5 + $0x8] sm:$0xff]   ;;  %v1258_v11 = vld [vmem:[%s1723_s5] sm:$0xff]   ;;  %vm577_vm2 = vcmask 130048   ;;  %vm636_vm3 = vcmask 64512  }
  0x4d   : > { %s350_s13 = scalar_select %p349_p8, %s1483_s9, 1  ;;  %1130 = vmatpush3.bf16.msra.mxu0 %v1255_v7  ;;  %1137 = vmatprep.subr.bf16.mxu1 %v1411_v8  ;;  %v398_v12 = vld [vmem:[%s1575_s25] sm:$0xff]  ;;  %vm689_vm4 = vcmask 1043456  }
  0x4e   : > { %1131 = vmatprep.subr.bf16.mxu0 %v1411_v8  ;;  %1141 = vmatprep.mubr.msk.bf16.mxu1 %vm1412_vm1, %v1411_v8  ;;  %v399_v13 = vpack.c.bf16 %v398_v12, %v398_v12  ;;  %v1073_v18 = vld [vmem:[%s1720_s2] ss:$0 sm:$0xff]  ;;  %s1413_s25 = smov 80   ;;  %v1259_v39 = vld [vmem:[%s1724_s6 + $0x8] sm:$0xff]   ;;  %p1748_p11 = scmp.ne.s32.totalorder %s1742_s26, 0 }
  0x4f   : > { %s1072_s23 = sshll.u32 %s350_s13, 3  ;;  %1138 = vmatpush3.bf16.msra.mxu1 %v1257_v10  ;;  %v1074_v20 = vld [vmem:[%s1721_s3] ss:$0 sm:$0xff]  ;;  %s1414_s13 = smov 112  }
  0x50   : > { %s352_s21 = scalar_lea.vmem %s1718_s0, %s1072_s23  ;;  %1139 = vmatprep.subr.bf16.mxu1 %v1411_v8  ;;  %s1415_s23 = smov 96   ;;  %v1260_v40 = vld [vmem:[%s1724_s6] sm:$0xff]  }
  0x51   : > { %v368_v0 = vld [vmem:[%s352_s21] sm:$0xff]  ;;  %1132 = vmatpush3.bf16.msra.mxu0 %v1256_v9  ;;  %s1416_s24 = smov [#allocation7]  }
  0x52   : > { %v370_v1 = vsel %vm369_vm0, %v368_v0, 0.0  ;;  %1145 = vmatprep.subr.bf16.mxu0 %v1411_v8  ;;  %s1341_s14 = sshll.u32 %s1416_s24, 4  ;;  %s1342_s14 = int_to_ptr.vmem [resolvable:$false] %s1341_s14 }
  0x53   : > { %371 = vadd.xlane.f32.xlu0 %v370_v1  ;;  %1140 = vmatpush3.bf16.msra.mxu1 %v1258_v11  ;;  %s1343_s16 = scalar_lea.vmem %s1342_s14, 256 }
  0x56   : > { %1142 = vmatmul.mubr.msk.bf16.vlgmr.msra.gmra.mxu1 %vm369_vm0, %v399_v13 }
  0xdc   : > { %v372_v2 = vpop.xlane.xlu0 %371 }
  0xdd   : > { %v374_v3 = vmul.f32 0.03125, %v372_v2 }
  0xdf   : > { %v375_v4 = vsub.f32 %v368_v0, %v374_v3 }
  0xe1   : > { %v376_v5 = vmul.f32 %v375_v4, %v375_v4 }
  0xe3   : > { %v377_v6 = vsel %vm369_vm0, %v376_v5, 0.0 }
  0xe4   : > { %378 = vadd.xlane.f32.xlu0 %v377_v6 }
 0x116   : > { %v505_v24 = vpop.f32.mrf.mxu1 }
 0x117   : > { %v563_v25 = vpack.c.bf16 %v505_v24, %v505_v24 }
 0x118   : > { %v1143_v26 = vpop.f32.mrf.mxu1 }
 0x119   : > { %v585_v27 = vsel %vm577_vm2, %v563_v25, 0  ;;  %1189 = vmatprep.subr.msk.bf16.mxu1 %vm577_vm2, %v563_v25  ;;  %v1262_v26 = vld [vmem:[%s1725_s7] sm:$0xff]  }
 0x11a   : > { %v508_v28 = vpop.f32.mrf.mxu1  ;;  %1154 = vmatpush3.bf16.xpose.msra.mxu1 %v585_v27  ;;  %v1261_v27 = vld [vmem:[%s1725_s7 + $0x8] sm:$0xff]  }
 0x11b   : > { %1165 = vmatprep.subr.bf16.mxu1 %v1411_v8 }
 0x11c   : > { %v1144_v29 = vpop.f32.mrf.mxu1 }
 0x16d   : > { %v379_v14 = vpop.xlane.xlu0 %378 }
 0x16e   : > { %v380_v15 = vmul.f32 0.03125, %v379_v14 }
 0x170   : > { %v381_v16 = vadd.f32 1e-05, %v380_v15 }
 0x172   : > { %1265 = vrsqrt.f32 %v381_v16 }
 0x17f   : > { %v1266_v17 = vpop.eup %1265 }
 0x180   : > { %v383_v19 = vmul.f32 %v1266_v17, %v375_v4 }
 0x182   : > { %v390_v21 = vmul.f32 %v1073_v18, %v383_v19 }
 0x184   : > { %v397_v22 = vadd.f32 %v1074_v20, %v390_v21 }
 0x186   : > { %v400_v23 = vpack.c.bf16 %v397_v22, %v397_v22 }
 0x188   : > { %1134 = vmatmul.mubr.msk.bf16.vlgmr.msra.gmra.mxu0 %vm369_vm0, %v400_v23 }
 0x189   : > { %1149 = vmatprep.mubr.msk.bf16.mxu0 %vm1412_vm1, %v1411_v8  ;;  %1146 = vmatpush3.bf16.msra.mxu0 %v1259_v39 }
 0x18a   : > { %1147 = vmatprep.subr.bf16.mxu0 %v1411_v8 }
 0x18d   : > { %1148 = vmatpush3.bf16.msra.mxu0 %v1260_v40 }
 0x190   : > { %1150 = vmatmul.mubr.msk.bf16.vlgmr.msra.gmra.mxu0 %vm369_vm0, %v399_v13 }
 0x248   : > { %v450_v30 = vpop.f32.mrf.mxu0 }
 0x249   : > { %572 = vrot.lane.b32.xlu0 %v450_v30, %s1413_s25  ;;  %566 = vrot.lane.b32.xlu1 %v450_v30, %s1414_s13  ;;  %s1103_s13 = sshll.u32 %s1483_s9, 7  ;;  %s957_s9 = scalar_lea.sflag [#allocation4], %s1569_s22 }
 0x24a   : > { %v1135_v31 = vpop.f32.mrf.mxu0  ;;  %s1674_s11 = scalar_lea.hbm %s1726_s8, %s1103_s13 }
 0x24c   : > { %v453_v32 = vpop.f32.mrf.mxu0 }
 0x24d   : > { %569 = vrot.lane.b32.xlu1 %v450_v30, %s1415_s23  ;;  %s348_s23 = scalar_lea.vmem [#allocation7], %s1069_s17 }
 0x24e   : > { %v1136_v33 = vpop.f32.mrf.mxu0  ;;  %s970_s18 = sshll.u32 %s348_s23, 4  ;;  %s1676_s18 = int_to_ptr.vmem [resolvable:$true] %s970_s18 }
 0x24f   : > { %s1337_s17 = scalar_lea.vmem %s1676_s18, 128  ;;  %p1344_p2 = scmp.lt.s32.totalorder %s1676_s18, %s1342_s14 }
 0x250   : > { %v557_v5 = vpop.f32.mrf.mxu0  ;;  %p1338_p3 = scmp.ne.s32.totalorder %s1676_s18, %s1337_s17  ;;  %p1345_p13 = scmp.lt.s32.totalorder %s1343_s16, %s1337_s17 }
 0x251   : > { %v564_v10 = vpack.c.bf16 %v557_v5, %v557_v5 }
 0x252   : > { %v1151_v6 = vpop.f32.mrf.mxu0  ;;  %p1339_p7 = pnand %p1338_p3, %p1748_p11  ;;  %p1346_p0 = por %p1345_p13, %p1344_p2 }
 0x253   : > { %v691_v11 = vsel %vm689_vm4, %v564_v10, 0  ;;  %1190 = vmatprep.subr.msk.bf16.mxu0 %vm689_vm4, %v564_v10 }
 0x254   : > { %v560_v7 = vpop.f32.mrf.mxu0  ;;  %1160 = vmatpush3.bf16.msra.mxu0 %v691_v11  ;;  %p1340_p10 = pneg %p1339_p7 }
 0x255   : > { %1171 = vmatprep.subr.bf16.mxu0 %v1411_v8 }
 0x256   : > { %v1152_v9 = vpop.f32.mrf.mxu0  ;;  %p1347_p5 = pnand %p1346_p0, %p1340_p10 }
 0x2bb   : > { %v567_v34 = vpop.permute.xlu1 %566  ;;  %v573_v36 = vpop.permute.xlu0 %572 }
 0x2bc   : > { %v575_v35 = vpack.c.bf16 %v567_v34, %v450_v30  ;;  %v1264_v30 = vld [vmem:[%s1725_s7 + $0x18] sm:$0xff]   ;;  %v1263_v34 = vld [vmem:[%s1725_s7 + $0x10] sm:$0xff]  }
 0x2be   : > { %1155 = vmatprep.mubr.msk.bf16.mxu1 %vm577_vm2, %v575_v35 }
 0x2bf   : > { %v570_v37 = vpop.permute.xlu1 %569 }
 0x2c0   : > { %v576_v38 = vpack.c.bf16 %v573_v36, %v570_v37 }
 0x2c2   : > { %1156 = vmatmul.mubr.msk.bf16.vlgmr.msra.gmra.mxu1 %vm577_vm2, %v576_v38 }
 0x2c3   : > { %1167 = vmatprep.mubr.msk.bf16.mxu1 %vm1412_vm1, %v1411_v8  ;;  %1166 = vmatpush3.bf16.msra.mxu1 %v1261_v27 }
 0x2c4   : > { %1177 = vmatprep.subr.bf16.mxu1 %v1411_v8 }
 0x382   : > { %v1157_v41 = vpop.f32.mrf.mxu1 }
 0x383   : > { %v643_v46 = vsel %vm636_vm3, %v1157_v41, -inf }
 0x384   : > { %v621_v42 = vpop.f32.mrf.mxu1 }
 0x385   : > { %v637_v43 = vsel %vm636_vm3, %v621_v42, -inf }
 0x386   : > { %638 = vmax.xlane.f32.xlu1 %v637_v43  ;;  %v1158_v44 = vpop.f32.mrf.mxu1 }
 0x387   : > { %v646_v48 = vsel %vm636_vm3, %v1158_v44, -inf }
 0x388   : > { %v624_v45 = vpop.f32.mrf.mxu1 }
 0x389   : > { %v640_v47 = vsel %vm636_vm3, %v624_v45, -inf }
 0x38a   : > { %644 = vmax.xlane.f32.xlu1 %v643_v46  ;;  %641 = vmax.xlane.f32.xlu0 %v640_v47 }
 0x38e   : > { %647 = vmax.xlane.f32.xlu1 %v646_v48 }
 0x40f   : > { %v639_v49 = vpop.xlane.xlu1 %638 }
 0x410   : > { %v649_v50 = vsub.f32 %v621_v42, %v639_v49 }
 0x412   : > { %v653_v51 = vmul.f32 1.442695, %v649_v50 }
 0x413   : > { %v645_v52 = vpop.xlane.xlu1 %644  ;;  %v642_v53 = vpop.xlane.xlu0 %641 }
 0x414   : > { %1267 = vpow2.f32 %v653_v51  ;;  %v651_v54 = vsub.f32 %v1157_v41, %v645_v52  ;;  %v650_v55 = vsub.f32 %v624_v45, %v642_v53 }
 0x416   : > { %v655_v56 = vmul.f32 1.442695, %v650_v55  ;;  %v657_v57 = vmul.f32 1.442695, %v651_v54 }
 0x417   : > { %v648_v58 = vpop.xlane.xlu1 %647 }
 0x418   : > { %v652_v59 = vsub.f32 %v1158_v44, %v648_v58  ;;  %1269 = vpow2.f32 %v655_v56 }
 0x419   : > { %1271 = vpow2.f32 %v657_v57 }
 0x41a   : > { %v659_v60 = vmul.f32 1.442695, %v652_v59 }
 0x41c   : > { %1273 = vpow2.f32 %v659_v60 }
 0x421   : > { %v1268_v61 = vpop.eup %1267 }
 0x422   : > { %v661_v62 = vsel %vm636_vm3, %v1268_v61, 0.0 }
 0x423   : > { %662 = vadd.xlane.f32.xlu1 %v661_v62 }
 0x425   : > { %v1270_v63 = vpop.eup %1269 }
 0x426   : > { %v664_v0 = vsel %vm636_vm3, %v1270_v63, 0.0  ;;  %v1272_v1 = vpop.eup %1271 }
 0x427   : > { %665 = vadd.xlane.f32.xlu1 %v664_v0  ;;  %v667_v4 = vsel %vm636_vm3, %v1272_v1, 0.0 }
 0x429   : > { %v1274_v2 = vpop.eup %1273 }
 0x42a   : > { %v670_v3 = vsel %vm636_vm3, %v1274_v2, 0.0 }
 0x42b   : > { %671 = vadd.xlane.f32.xlu0 %v670_v3  ;;  %668 = vadd.xlane.f32.xlu1 %v667_v4 }
 0x4ac   : > { %v663_v12 = vpop.xlane.xlu1 %662 }
 0x4ad   : > { %1275 = vrcp.f32 %v663_v12 }
 0x4b0   : > { %v666_v13 = vpop.xlane.xlu1 %665 }
 0x4b1   : > { %1277 = vrcp.f32 %v666_v13 }
 0x4b4   : > { %v672_v14 = vpop.xlane.xlu0 %671  ;;  %v669_v15 = vpop.xlane.xlu1 %668 }
 0x4b5   : > { %1279 = vrcp.f32 %v672_v14 }
 0x4b6   : > { %1281 = vrcp.f32 %v669_v15 }
 0x4ba   : > { %v1276_v16 = vpop.eup %1275 }
 0x4bb   : > { %v677_v18 = vmul.f32 %v1276_v16, %v1268_v61 }
 0x4be   : > { %v1278_v17 = vpop.eup %1277 }
 0x4bf   : > { %v678_v19 = vmul.f32 %v1278_v17, %v1270_v63 }
 0x4c1   : > { %v681_v21 = vpack.c.bf16 %v678_v19, %v677_v18 }
 0x4c2   : > { %v1280_v20 = vpop.eup %1279 }
 0x4c3   : > { %v1282_v22 = vpop.eup %1281  ;;  %v680_v23 = vmul.f32 %v1280_v20, %v1274_v2  ;;  %1161 = vmatprep.mubr.msk.bf16.mxu0 %vm636_vm3, %v681_v21 }
 0x4c4   : > { %v679_v24 = vmul.f32 %v1282_v22, %v1272_v1 }
 0x4c6   : > { %v682_v25 = vpack.c.bf16 %v680_v23, %v679_v24 }
 0x4c8   : > { %1162 = vmatmul.mubr.msk.bf16.vlgmr.msra.gmra.mxu0 %vm636_vm3, %v682_v25 }
 0x4c9   : > { %1173 = vmatprep.mubr.msk.bf16.mxu0 %vm1412_vm1, %v1411_v8  ;;  %1172 = vmatpush3.bf16.msra.mxu0 %v1262_v26 }
 0x4ca   : > { %1183 = vmatprep.subr.bf16.mxu0 %v1411_v8 }
 0x588   : > { %v1163_v28 = vpop.f32.mrf.mxu0 }
 0x589   : > { %v847_v37 = vpack.c.bf16 %v1163_v28, %v1163_v28 }
 0x58a   : > { %v727_v29 = vpop.f32.mrf.mxu0 }
 0x58b   : > { %v742_v31 = vpack.c.bf16 %v727_v29, %v727_v29 }
 0x58c   : > { %v1164_v32 = vpop.f32.mrf.mxu0 }
 0x58d   : > { %1174 = vmatmul.mubr.msk.bf16.vlgmr.msra.gmra.mxu0 %vm577_vm2, %v742_v31  ;;  %v901_v36 = vpack.c.bf16 %v1164_v32, %v1164_v32 }
 0x58e   : > { %v730_v33 = vpop.f32.mrf.mxu0  ;;  %1184 = vmatpush3.bf16.msra.mxu0 %v1264_v30  ;;  %1185 = vmatprep.mubr.msk.bf16.mxu0 %vm1412_vm1, %v1411_v8 }
 0x58f   : > { %v745_v35 = vpack.c.bf16 %v730_v33, %v730_v33 }
 0x591   : > { %1168 = vmatmul.mubr.msk.bf16.vlgmr.msra.gmra.mxu1 %vm577_vm2, %v745_v35 }
 0x592   : > { %1178 = vmatpush3.bf16.msra.mxu1 %v1263_v34  ;;  %1179 = vmatprep.mubr.msk.bf16.mxu1 %vm1412_vm1, %v1411_v8 }
 0x595   : > { %1186 = vmatmul.mubr.msk.bf16.vlgmr.msra.gmra.mxu0 %vm577_vm2, %v901_v36 }
 0x599   : > { %1180 = vmatmul.mubr.msk.bf16.vlgmr.msra.gmra.mxu1 %vm577_vm2, %v847_v37 }
 0x64d   : > { %v841_v38 = vpop.f32.mrf.mxu0 }
 0x64f   : > { %v1175_v39 = vpop.f32.mrf.mxu0 }
 0x651   : > { %v792_v40 = vpop.f32.mrf.mxu1  ;;  %v844_v41 = vpop.f32.mrf.mxu0 }
 0x652   : > { %v842_v8 = vadd.f32 %v841_v38, %v792_v40 }
 0x653   : > { %v1169_v42 = vpop.f32.mrf.mxu1  ;;  %v1176_v43 = vpop.f32.mrf.mxu0 }
 0x655   : > { %v795_v44 = vpop.f32.mrf.mxu1  ;;  %v948_v45 = vpop.f32.mrf.mxu0 }
 0x657   : > { %v1170_v46 = vpop.f32.mrf.mxu1  ;;  %v1187_v47 = vpop.f32.mrf.mxu0 }
 0x659   : > { %v894_v48 = vpop.f32.mrf.mxu1  ;;  %v951_v49 = vpop.f32.mrf.mxu0 }
 0x65a   : > { %v900_v50 = vadd.f32 %v894_v48, %v842_v8 }
 0x65b   : > { %v1181_v51 = vpop.f32.mrf.mxu1  ;;  %v1188_v52 = vpop.f32.mrf.mxu0 }
 0x65c   : > { %v954_v53 = vadd.f32 %v948_v45, %v900_v50 }
 0x65d   : > { %v897_v54 = vpop.f32.mrf.mxu1 }
 0x65e   : > { %955 = vst.msk [vmem:[%s348_s23] sm:$0xff] %vm369_vm0, %v954_v53 }
 0x65f   : > { %v1182_v55 = vpop.f32.mrf.mxu1 }
 0x660   : > { %1350 = shalt.err (!%p1347_p5)
}
 0x661   : > { %s1351_s20 = scalar_lea.hbm %s1674_s11, 128  ;;  %s1355_s10 = scalar_lea.hbm %s1726_s8, 256 }
 0x662   : > { %p1352_p9 = scmp.ne.s32.totalorder %s1674_s11, %s1351_s20  ;;  %p1356_p4 = scmp.lt.s32.totalorder %s1674_s11, %s1726_s8 }
 0x663   : > { %p1357_p6 = scmp.lt.s32.totalorder %s1355_s10, %s1351_s20 }
 0x664   : > { %p1353_p12 = pnand %p1352_p9, %p1748_p11 }
 0x665   : > { %p1358_p8 = por %p1357_p6, %p1356_p4 }
 0x666   : > { %p1354_p1 = pneg %p1353_p12 }
 0x668   : > { %p1359_p3 = pnand %p1358_p8, %p1354_p1 }
 0x66a   : > { %1362 = shalt.err (!%p1359_p3)
}
 0x66b   : > { %1197 = dma.vmem_to_hbm [thread:$0]  (%p1748_p11), %s1676_s18, 128, %s1674_s11, %s957_s9  }
 0x66c PF: > { %s982_s13 = sand.u32 1, %s1393_s27   ;;  %p1749_p7 = scmp.ne.s32.totalorder %s1735_s12, 0 }
 0x66d   : > { %p1750_p10 = scmp.ge.s32.totalorder %s1405_s30, 2  ;;  %s983_s23 = scalar_lea.sflag [#allocation4], %s982_s13 }
 0x66f   : > { %p1208_p2 = pnand %p1750_p10, %p1749_p7 }
 0x671   : > { %p1209_p13 = pneg %p1208_p2 }
 0x673   : > { %1388 = dma.done.wait (%p1209_p13), %s983_s23, 128  }
 0x674   : > { %1390 = vsyncadd (%p1209_p13), %s983_s23, 4294967168  ;;  %s1751_s30 = sld [smem:[#allocation11_spill]]  ;;  %s1753_s27 = smov %s1397_s28 }
 0x675   : > { %s1752_s19 = sld [smem:[#allocation12_spill]]  ;;  %s1754_s28 = smov %s1401_s29 }
 0x67a   : > { %p22_p0 = scmp.ge.s32.totalorder %s1751_s30, 4  }
 0x67b   : > { %s1755_s29 = smov %s1752_s19 }
 0x67c   :  { %24 = sbr.rel (!%p22_p0) target bundleno = 8 (0x8), region = 107 }
 0x681   :  { %988 = vsyncpa [#allocation3], 1 }
 0x682   :  { %990 = vsyncpa [#allocation3 + $0x1], 1 }
 0x683   :  { %991 = vsyncpa [#allocation6], 1 }
 0x684   :  { %992 = vsyncpa [#allocation4], 1 }
 0x685   :  { %994 = vsyncpa [#allocation4 + $0x1], 1 }

</bundles_post_ra>
